<compile_context>
chip_gen: v7x
topology: tpu7x:2x2x1
jax: 0.10.0
libtpu: 0.0.40
codegen_flags: <defaults>
</compile_context>

<pallas_src>
import jax
import jax.numpy as jnp
from jax.experimental import pallas as pl
from jax.experimental.pallas import tpu as pltpu

IN_FEATURES = 224
OUT_FEATURES = 96
N_PAD = 128  # lane-dense padded output width (96 -> 128)


def _round_up(x, m):
    return ((x + m - 1) // m) * m


def _linear_gelu_kernel(x_ref, w_ref, b_ref, o_ref):
    # x_ref: (TM, 224), w_ref: (224, 128), b_ref: (1, 128), o_ref: (TM, 128)
    x = x_ref[...]
    w = w_ref[...]
    b = b_ref[...].astype(jnp.float32)

    v1 = jnp.dot(x, w, preferred_element_type=jnp.float32) + b  # linear (f32 acc)
    v2 = v1 * 0.5
    v3 = v1 + v1 * v1 * v1 * 0.044715
    v4 = v3 * 0.7978845608028654
    v5 = jnp.tanh(v4)                                            # EUP
    v7 = v2 * (v5 + 1.0)
    o_ref[...] = v7.astype(o_ref.dtype)


def linear_gelu(x, weight, bias, *, tm_max=1024):
    """x: (..., 224); weight: (96, 224) torch-style; bias: (96,) -> (..., 96)."""
    *lead, k = x.shape
    assert k == IN_FEATURES
    m = 1
    for d in lead:
        m *= d
    x2d = x.reshape(m, k)

    # M tiling: largest tile up to tm_max, sublane-aligned; pad M so the grid
    # divides evenly (padded rows compute GELU(bias) and are sliced off).
    tm = min(tm_max, _round_up(m, 8))
    m_pad = _round_up(max(m, 8), tm)
    if m_pad != m:
        x2d = jnp.pad(x2d, ((0, m_pad - m), (0, 0)))

    # Lane-dense output: zero-pad weight columns / bias from 96 to 128.
    w_t = jnp.pad(weight.T.astype(x.dtype),
                  ((0, 0), (0, N_PAD - OUT_FEATURES)))           # (224, 128)
    b2d = jnp.pad(bias.reshape(1, OUT_FEATURES),
                  ((0, 0), (0, N_PAD - OUT_FEATURES)))           # (1, 128)

    grid = (m_pad // tm,)
    cost = pl.CostEstimate(
        flops=2 * m_pad * IN_FEATURES * N_PAD,
        transcendentals=m_pad * N_PAD,
        bytes_accessed=4 * (m_pad * IN_FEATURES          # x read
                            + IN_FEATURES * N_PAD        # weight read
                            + N_PAD                      # bias read
                            + m_pad * N_PAD),            # out write
    )

    out = pl.pallas_call(
        _linear_gelu_kernel,
        out_shape=jax.ShapeDtypeStruct((m_pad, N_PAD), x.dtype),
        grid=grid,
        in_specs=[
            pl.BlockSpec((tm, IN_FEATURES), lambda i: (i, 0)),     # streamed
            pl.BlockSpec((IN_FEATURES, N_PAD), lambda i: (0, 0)),  # resident
            pl.BlockSpec((1, N_PAD), lambda i: (0, 0)),            # resident
        ],
        out_specs=pl.BlockSpec((tm, N_PAD), lambda i: (i, 0)),
        compiler_params=pltpu.CompilerParams(
            dimension_semantics=("parallel",),   # v7x: shard M across both TCs
            vmem_limit_bytes=64 << 20,
        ),
        cost_estimate=cost,
    )(x2d, w_t, b2d)

    out = out[:m, :OUT_FEATURES]
    return out.reshape(*lead, OUT_FEATURES)


def reference(x, weight, bias):
    v1 = jnp.einsum("...k,nk->...n", x, weight) + bias
    v2 = v1 * 0.5
    v3 = v1 + v1 * v1 * v1 * 0.044715
    v4 = v3 * 0.7978845608028654
    v5 = jnp.tanh(v4)
    return v2 * (v5 + 1.0)


if __name__ == "__main__":
    key = jax.random.PRNGKey(0)
    k_x, k_w, k_b = jax.random.split(key, 3)

    # Small shape consistent with the module: last dim = 224 (Linear in_features).
    x = jax.random.normal(k_x, (2, 4, 8, IN_FEATURES), dtype=jnp.float32)

    # Deterministic parameter init (torch.nn.Linear-style uniform bound).
    bound = 1.0 / (IN_FEATURES ** 0.5)
    weight = jax.random.uniform(
        k_w, (OUT_FEATURES, IN_FEATURES), minval=-bound, maxval=bound,
        dtype=jnp.float32)
    bias = jax.random.uniform(
        k_b, (OUT_FEATURES,), minval=-bound, maxval=bound, dtype=jnp.float32)

    fn = jax.jit(linear_gelu)
    out = jax.block_until_ready(fn(x, weight, bias))

    ref = reference(x, weight, bias)
    assert out.shape == (2, 4, 8, OUT_FEATURES)
    assert jnp.allclose(out, ref, atol=1e-4, rtol=1e-4)

    print("KERNEL_OK")
</pallas_src>

<mosaic_0001>
module attributes {stable_mosaic.version = 11 : i64} {
  func.func @_linear_gelu_kernel(%arg0: i32, %arg1: memref<64x224xf32, #tpu.memory_space<vmem>>, %arg2: memref<224x128xf32, #tpu.memory_space<vmem>>, %arg3: memref<1x128xf32, #tpu.memory_space<vmem>>, %arg4: memref<64x128xf32, #tpu.memory_space<vmem>>) attributes {dimension_semantics = [#tpu.dimension_semantics<parallel>], iteration_bounds = array<i64: 1>, scalar_prefetch = 0 : i64, scratch_operands = 0 : i64, tpu.core_type = #tpu.core_type<tc>, window_params = [{transform_indices = @transform_0, window_bounds = array<i64: 64, 224>}, {pipeline_mode = #tpu.pipeline_mode<synchronous>, transform_indices = @transform_1, window_bounds = array<i64: 224, 128>}, {pipeline_mode = #tpu.pipeline_mode<synchronous>, transform_indices = @transform_2, window_bounds = array<i64: 1, 128>}, {transform_indices = @transform_3, window_bounds = array<i64: 64, 128>}]} {
    %c0 = arith.constant 0 : index
    %c0_0 = arith.constant 0 : index
    %0 = vector.load %arg1[%c0, %c0_0] : memref<64x224xf32, #tpu.memory_space<vmem>>, vector<64x224xf32>
    %c0_1 = arith.constant 0 : index
    %c0_2 = arith.constant 0 : index
    %1 = vector.load %arg2[%c0_1, %c0_2] : memref<224x128xf32, #tpu.memory_space<vmem>>, vector<224x128xf32>
    %c0_3 = arith.constant 0 : index
    %c0_4 = arith.constant 0 : index
    %2 = vector.load %arg3[%c0_3, %c0_4] : memref<1x128xf32, #tpu.memory_space<vmem>>, vector<1x128xf32>
    %cst = arith.constant dense<0.000000e+00> : vector<64x128xf32>
    %3 = tpu.matmul %0, %1, %cst {dimension_numbers = #tpu.dot_dimension_numbers<[1], [0], [0], [1], [0, 0, 1, 1], [], []>} : vector<64x224xf32>, vector<224x128xf32>, vector<64x128xf32> -> vector<64x128xf32>
    %4 = vector.broadcast %2 : vector<1x128xf32> to vector<64x128xf32>
    %5 = arith.addf %3, %4 : vector<64x128xf32>
    %cst_5 = arith.constant 5.000000e-01 : f32
    %6 = vector.broadcast %cst_5 : f32 to vector<64x128xf32>
    %7 = arith.mulf %5, %6 : vector<64x128xf32>
    %8 = arith.mulf %5, %5 : vector<64x128xf32>
    %9 = arith.mulf %8, %5 : vector<64x128xf32>
    %cst_6 = arith.constant 4.471500e-02 : f32
    %10 = vector.broadcast %cst_6 : f32 to vector<64x128xf32>
    %11 = arith.mulf %9, %10 : vector<64x128xf32>
    %12 = arith.addf %5, %11 : vector<64x128xf32>
    %cst_7 = arith.constant 0.797884583 : f32
    %13 = vector.broadcast %cst_7 : f32 to vector<64x128xf32>
    %14 = arith.mulf %12, %13 : vector<64x128xf32>
    %15 = math.tanh %14 : vector<64x128xf32>
    %cst_8 = arith.constant 1.000000e+00 : f32
    %16 = vector.broadcast %cst_8 : f32 to vector<64x128xf32>
    %17 = arith.addf %15, %16 : vector<64x128xf32>
    %18 = arith.mulf %7, %17 : vector<64x128xf32>
    %c0_9 = arith.constant 0 : index
    %c0_10 = arith.constant 0 : index
    %19 = vector.load %arg4[%c0_9, %c0_10] : memref<64x128xf32, #tpu.memory_space<vmem>>, vector<64x128xf32>
    tpu.vector_store %arg4[%c0_9, %c0_10], %18 {strides = array<i32>} : memref<64x128xf32, #tpu.memory_space<vmem>>, vector<64x128xf32>,
    return
  }
  func.func @transform_0(%arg0: i32) -> (i32, i32) {
    %c0_i32 = arith.constant 0 : i32
    %c0_i32_0 = arith.constant 0 : i32
    return %arg0, %c0_i32 : i32, i32
  }
  func.func @transform_1(%arg0: i32) -> (i32, i32) {
    %c0_i32 = arith.constant 0 : i32
    %c0_i32_0 = arith.constant 0 : i32
    %c0_i32_1 = arith.constant 0 : i32
    return %c0_i32, %c0_i32_0 : i32, i32
  }
  func.func @transform_2(%arg0: i32) -> (i32, i32) {
    %c0_i32 = arith.constant 0 : i32
    %c0_i32_0 = arith.constant 0 : i32
    %c0_i32_1 = arith.constant 0 : i32
    return %c0_i32, %c0_i32_0 : i32, i32
  }
  func.func @transform_3(%arg0: i32) -> (i32, i32) {
    %c0_i32 = arith.constant 0 : i32
    %c0_i32_0 = arith.constant 0 : i32
    return %arg0, %c0_i32 : i32, i32
  }
}

</mosaic_0001>

<bundles_post_ra>
// kernel: linear_gelu.1
= control target key start
LH: loop header
LB: loop body
LE: loop exit
PB: predicated region body
PF: predicated region fallthrough
CT: control target
= control target key end

     0   :  { %8 = vsyncpa [#allocation3], 0  ;;  %s692_s0 = inlined_call_operand.hbm [shape: f32[64,224], index: 0, kind: input, shape index: {}]   ;;  %s693_s1 = inlined_call_operand.hbm [shape: f32[224,128], index: 1, kind: input, shape index: {}]   ;;  %s694_s2 = inlined_call_operand.hbm [shape: f32[1,128], index: 2, kind: input, shape index: {}]   ;;  %s695_s3 = inlined_call_operand.hbm [shape: f32[64,128], index: 3, kind: output, shape index: {}]  }
   0x1   :  { %9 = vsyncpa [#allocation6], 0 }
   0x2   :  { %10 = vsyncpa [#allocation4], 0  ;;  %s531_s12 = smov [#allocation5]   ;;  %s437_s16 = scalar_lea.hbm %s693_s1, 3584 }
   0x3   :  { %s28_s13 = sshll.u32 %s531_s12, 4  ;;  %p438_p0 = scmp.ne.s32.totalorder %s693_s1, %s437_s16  ;;  %s29_s13 = int_to_ptr.vmem [resolvable:$true] %s28_s13 }
   0x4   :  { %p441_p1 = scmp.lt.u32.totalorder %s437_s16, %s693_s1 }
   0x6   :  { %p443_p2 = pnand %p441_p1, %p438_p0 }
   0x8   :  { %446 = shalt.err (!%p443_p2)
}
   0x9   :  { %s447_s21 = scalar_lea.vmem %s29_s13, 3584  ;;  %p452_p4 = scmp.lt.s32.totalorder %s29_s13, %s29_s13 }
   0xa   :  { %p448_p3 = scmp.ne.s32.totalorder %s29_s13, %s447_s21  ;;  %p453_p5 = scmp.lt.s32.totalorder %s447_s21, %s447_s21 }
   0xc   :  { %p454_p6 = por %p453_p5, %p452_p4 }
   0xe   :  { %p455_p7 = pnand %p454_p6, %p448_p3 }
  0x10   :  { %458 = shalt.err (!%p455_p7)
}
  0x11   :  { %s532_s22 = smov 128   ;;  %s533_s23 = smov 8  }
  0x12   :  { %34 = dma.hbm_to_vmem [thread:$0]  %s693_s1, 3584, %s29_s13, [#allocation6], %s532_s22, %s532_s22, %s533_s23  }
  0x13   :  { %s534_s26 = smov [#allocation2]   ;;  %s459_s30 = scalar_lea.hbm %s692_s0, 2048 }
  0x14   :  { %s16_s27 = sshll.u32 %s534_s26, 4  ;;  %p460_p8 = scmp.ne.s32.totalorder %s692_s0, %s459_s30  ;;  %s17_s27 = int_to_ptr.vmem [resolvable:$true] %s16_s27 }
  0x15   :  { %p463_p9 = scmp.lt.u32.totalorder %s459_s30, %s692_s0 }
  0x17   :  { %p465_p10 = pnand %p463_p9, %p460_p8 }
  0x19   :  { %468 = shalt.err (!%p465_p10)
}
  0x1a   :  { %s469_s8 = scalar_lea.vmem %s17_s27, 2048  ;;  %p474_p12 = scmp.lt.s32.totalorder %s17_s27, %s17_s27 }
  0x1b   :  { %p470_p11 = scmp.ne.s32.totalorder %s17_s27, %s469_s8  ;;  %p475_p13 = scmp.lt.s32.totalorder %s469_s8, %s469_s8 }
  0x1d   :  { %p476_p0 = por %p475_p13, %p474_p12 }
  0x1f   :  { %p477_p1 = pnand %p476_p0, %p470_p11 }
  0x21   :  { %480 = shalt.err (!%p477_p1)
}
  0x22   :  { %s535_s1 = smov 256   ;;  %s536_s9 = smov 16  }
  0x23   :  { %22 = dma.hbm_to_vmem [thread:$0]  %s692_s0, 2048, %s17_s27, [#allocation3], %s535_s1, %s535_s1, %s536_s9  }
  0x24   :  { %s537_s12 = smov [#allocation7]   ;;  %s481_s16 = scalar_lea.hbm %s694_s2, 16 }
  0x25   :  { %s41_s13 = sshll.u32 %s537_s12, 4  ;;  %p482_p2 = scmp.ne.s32.totalorder %s694_s2, %s481_s16  ;;  %s42_s13 = int_to_ptr.vmem [resolvable:$true] %s41_s13 }
  0x26   :  { %p485_p3 = scmp.lt.u32.totalorder %s481_s16, %s694_s2 }
  0x28   :  { %p487_p4 = pnand %p485_p3, %p482_p2 }
  0x2a   :  { %490 = shalt.err (!%p487_p4)
}
  0x2b   :  { %s491_s21 = scalar_lea.vmem %s42_s13, 16  ;;  %s495_s0 = scalar_lea.vmem %s42_s13, 32 }
  0x2c   :  { %p492_p5 = scmp.ne.s32.totalorder %s42_s13, %s491_s21  ;;  %p496_p6 = scmp.lt.s32.totalorder %s42_s13, %s42_s13 }
  0x2d   :  { %p497_p7 = scmp.lt.s32.totalorder %s495_s0, %s491_s21 }
  0x2f   :  { %p498_p8 = por %p497_p7, %p496_p6 }
  0x31   :  { %p499_p9 = pnand %p498_p8, %p492_p5 }
  0x33   :  { %502 = shalt.err (!%p499_p9)
}
  0x34   :  { %44 = dma.hbm_to_vmem [thread:$0]  %s694_s2, 16, %s42_s13, [#allocation6]  }
  0x35   :  { %525 = dma.done.wait [#allocation3], 2048  }
  0x36   :  { %526 = vsyncadd [#allocation3], 4294965248 }
  0x37   :  { %527 = dma.done.wait [#allocation6], 3600  }
  0x38   :  { %528 = vsyncadd [#allocation6], 4294963696  ;;  %v538_v0 = vmov 0.0|0.0   ;;  %v70_v1 = vld [vmem:[#allocation5] sm:$0xff]  ;;  %v71_v2 = vld [vmem:[#allocation5 + $0x8] sm:$0xff]  ;;  %vm105_vm0 = vcmask 785408  }
  0x39   :  { %342 = vmatprep.subr.bf16.mxu0 %v538_v0  ;;  %384 = vmatprep.subr.bf16.mxu1 %v538_v0  ;;  %v72_v3 = vld [vmem:[#allocation5 + $0x10] sm:$0xff]  ;;  %v343_v4 = vpack.c.bf16 %v71_v2, %v70_v1  ;;  %v73_v5 = vld [vmem:[#allocation5 + $0x18] sm:$0xff]  ;;  %v74_v7 = vld [vmem:[#allocation5 + $0x20] sm:$0xff]  ;;  %s539_s2 = smov [#allocation8]  }
  0x3a   :  { %v346_v6 = vpack.c.bf16 %v73_v5, %v72_v3  ;;  %v75_v8 = vld [vmem:[#allocation5 + $0x28] sm:$0xff]  ;;  %v76_v10 = vld [vmem:[#allocation5 + $0x30] sm:$0xff]  ;;  %v77_v11 = vld [vmem:[#allocation5 + $0x38] sm:$0xff]  ;;  %s320_s26 = sshll.u32 %s539_s2, 4  ;;  %s321_s26 = int_to_ptr.vmem [resolvable:$true] %s320_s26 }
  0x3b   :  { %344 = vmatpush1.bf16.msra.mxu0 %v343_v4  ;;  %398 = vmatpush1.bf16.msra.mxu1 %v343_v4  ;;  %v349_v9 = vpack.c.bf16 %v75_v8, %v74_v7  ;;  %v55_v12 = vld [vmem:[#allocation2 + $0x8] sm:$0xff]  ;;  %v352_v14 = vpack.c.bf16 %v77_v11, %v76_v10  ;;  %v78_v15 = vld [vmem:[#allocation5 + $0x40] sm:$0xff]  ;;  %v80_v18 = vld [vmem:[#allocation5 + $0x50] sm:$0xff]  ;;  %s503_s27 = scalar_lea.vmem %s321_s26, 1024  ;;  %p508_p11 = scmp.lt.s32.totalorder %s321_s26, %s321_s26 }
  0x3c   :  { %345 = vmatprep.subr.bf16.mxu0 %v538_v0  ;;  %385 = vmatprep.subr.bf16.mxu1 %v538_v0  ;;  %v63_v13 = vld [vmem:[#allocation2 + $0x48] sm:$0xff]  ;;  %v81_v19 = vld [vmem:[#allocation5 + $0x58] sm:$0xff]  ;;  %v82_v21 = vld [vmem:[#allocation5 + $0x60] sm:$0xff]  ;;  %p504_p10 = scmp.ne.s32.totalorder %s321_s26, %s503_s27  ;;  %p509_p12 = scmp.lt.s32.totalorder %s503_s27, %s503_s27 }
  0x3d   :  { %334 = vmatprep.mubr.msk.f32.mxu0 %vm105_vm0, %v55_v12  ;;  %338 = vmatprep.mubr.msk.f32.mxu1 %vm105_vm0, %v63_v13  ;;  %v79_v16 = vld [vmem:[#allocation5 + $0x48] sm:$0xff]  ;;  %v358_v20 = vpack.c.bf16 %v81_v19, %v80_v18  ;;  %v84_v24 = vld [vmem:[#allocation5 + $0x70] sm:$0xff]  ;;  %v85_v25 = vld [vmem:[#allocation5 + $0x78] sm:$0xff] }
  0x3e   :  { %v355_v17 = vpack.c.bf16 %v79_v16, %v78_v15  ;;  %v83_v22 = vld [vmem:[#allocation5 + $0x68] sm:$0xff]  ;;  %v364_v26 = vpack.c.bf16 %v85_v25, %v84_v24  ;;  %v86_v27 = vld [vmem:[#allocation5 + $0x80] sm:$0xff]  ;;  %v88_v30 = vld [vmem:[#allocation5 + $0x90] sm:$0xff]  ;;  %p510_p13 = por %p509_p12, %p508_p11 }
  0x3f   :  { %347 = vmatpush1.bf16.msra.mxu0 %v346_v6  ;;  %399 = vmatpush1.bf16.msra.mxu1 %v346_v6  ;;  %v361_v23 = vpack.c.bf16 %v83_v22, %v82_v21  ;;  %v87_v28 = vld [vmem:[#allocation5 + $0x88] sm:$0xff]  ;;  %v89_v31 = vld [vmem:[#allocation5 + $0x98] sm:$0xff]  ;;  %v90_v33 = vld [vmem:[#allocation5 + $0xa0] sm:$0xff] }
  0x40   :  { %348 = vmatprep.subr.bf16.mxu0 %v538_v0  ;;  %386 = vmatprep.subr.bf16.mxu1 %v538_v0  ;;  %v367_v29 = vpack.c.bf16 %v87_v28, %v86_v27  ;;  %v370_v32 = vpack.c.bf16 %v89_v31, %v88_v30  ;;  %v91_v34 = vld [vmem:[#allocation5 + $0xa8] sm:$0xff]  ;;  %v92_v36 = vld [vmem:[#allocation5 + $0xb0] sm:$0xff]  ;;  %v93_v37 = vld [vmem:[#allocation5 + $0xb8] sm:$0xff]  ;;  %p511_p0 = pnand %p510_p13, %p504_p10 }
  0x41   :  { %v373_v35 = vpack.c.bf16 %v91_v34, %v90_v33  ;;  %v376_v38 = vpack.c.bf16 %v93_v37, %v92_v36  ;;  %v94_v39 = vld [vmem:[#allocation5 + $0xc0] sm:$0xff]  ;;  %v95_v40 = vld [vmem:[#allocation5 + $0xc8] sm:$0xff]  ;;  %v96_v42 = vld [vmem:[#allocation5 + $0xd0] sm:$0xff] }
  0x42   :  { %v379_v41 = vpack.c.bf16 %v95_v40, %v94_v39  ;;  %v97_v43 = vld [vmem:[#allocation5 + $0xd8] sm:$0xff]  ;;  %v54_v45 = vld [vmem:[#allocation2] sm:$0xff]  ;;  %v56_v49 = vld [vmem:[#allocation2 + $0x10] sm:$0xff] }
  0x43   :  { %350 = vmatpush1.bf16.msra.mxu0 %v349_v9  ;;  %400 = vmatpush1.bf16.msra.mxu1 %v349_v9  ;;  %v382_v44 = vpack.c.bf16 %v97_v43, %v96_v42  ;;  %v62_v46 = vld [vmem:[#allocation2 + $0x40] sm:$0xff]  ;;  %v57_v47 = vld [vmem:[#allocation2 + $0x18] sm:$0xff]  ;;  %v64_v50 = vld [vmem:[#allocation2 + $0x50] sm:$0xff] }
  0x44   :  { %351 = vmatprep.subr.bf16.mxu0 %v538_v0  ;;  %387 = vmatprep.subr.bf16.mxu1 %v538_v0  ;;  %v65_v48 = vld [vmem:[#allocation2 + $0x58] sm:$0xff]  ;;  %v59_v51 = vld [vmem:[#allocation2 + $0x28] sm:$0xff]  ;;  %v58_v53 = vld [vmem:[#allocation2 + $0x20] sm:$0xff] }
  0x45   :  { %v67_v52 = vld [vmem:[#allocation2 + $0x68] sm:$0xff]  ;;  %v66_v54 = vld [vmem:[#allocation2 + $0x60] sm:$0xff]  ;;  %v61_v55 = vld [vmem:[#allocation2 + $0x38] sm:$0xff] }
  0x46   :  { %v69_v56 = vld [vmem:[#allocation2 + $0x78] sm:$0xff]  ;;  %v60_v57 = vld [vmem:[#allocation2 + $0x30] sm:$0xff]  ;;  %v333_v59 = vld [vmem:[#allocation7] ss:$0 sm:$0xff] }
  0x47   :  { %353 = vmatpush1.bf16.msra.mxu0 %v352_v14  ;;  %401 = vmatpush1.bf16.msra.mxu1 %v352_v14  ;;  %v68_v58 = vld [vmem:[#allocation2 + $0x70] sm:$0xff] }
  0x48   :  { %354 = vmatprep.subr.bf16.mxu0 %v538_v0  ;;  %388 = vmatprep.subr.bf16.mxu1 %v538_v0 }
  0x4b   :  { %356 = vmatpush1.bf16.msra.mxu0 %v355_v17  ;;  %402 = vmatpush1.bf16.msra.mxu1 %v355_v17 }
  0x4c   :  { %357 = vmatprep.subr.bf16.mxu0 %v538_v0  ;;  %389 = vmatprep.subr.bf16.mxu1 %v538_v0 }
  0x4f   :  { %359 = vmatpush1.bf16.msra.mxu0 %v358_v20  ;;  %403 = vmatpush1.bf16.msra.mxu1 %v358_v20 }
  0x50   :  { %360 = vmatprep.subr.bf16.mxu0 %v538_v0  ;;  %390 = vmatprep.subr.bf16.mxu1 %v538_v0 }
  0x53   :  { %362 = vmatpush1.bf16.msra.mxu0 %v361_v23  ;;  %404 = vmatpush1.bf16.msra.mxu1 %v361_v23 }
  0x54   :  { %363 = vmatprep.subr.bf16.mxu0 %v538_v0  ;;  %391 = vmatprep.subr.bf16.mxu1 %v538_v0 }
  0x57   :  { %365 = vmatpush1.bf16.msra.mxu0 %v364_v26  ;;  %405 = vmatpush1.bf16.msra.mxu1 %v364_v26 }
  0x58   :  { %366 = vmatprep.subr.bf16.mxu0 %v538_v0  ;;  %392 = vmatprep.subr.bf16.mxu1 %v538_v0 }
  0x5b   :  { %368 = vmatpush1.bf16.msra.mxu0 %v367_v29  ;;  %406 = vmatpush1.bf16.msra.mxu1 %v367_v29 }
  0x5c   :  { %369 = vmatprep.subr.bf16.mxu0 %v538_v0  ;;  %393 = vmatprep.subr.bf16.mxu1 %v538_v0 }
  0x5f   :  { %371 = vmatpush1.bf16.msra.mxu0 %v370_v32  ;;  %407 = vmatpush1.bf16.msra.mxu1 %v370_v32 }
  0x60   :  { %372 = vmatprep.subr.bf16.mxu0 %v538_v0  ;;  %394 = vmatprep.subr.bf16.mxu1 %v538_v0 }
  0x63   :  { %374 = vmatpush1.bf16.msra.mxu0 %v373_v35  ;;  %408 = vmatpush1.bf16.msra.mxu1 %v373_v35 }
  0x64   :  { %375 = vmatprep.subr.bf16.mxu0 %v538_v0  ;;  %395 = vmatprep.subr.bf16.mxu1 %v538_v0 }
  0x67   :  { %377 = vmatpush1.bf16.msra.mxu0 %v376_v38  ;;  %409 = vmatpush1.bf16.msra.mxu1 %v376_v38 }
  0x68   :  { %378 = vmatprep.subr.bf16.mxu0 %v538_v0  ;;  %396 = vmatprep.subr.bf16.mxu1 %v538_v0 }
  0x6b   :  { %380 = vmatpush1.bf16.msra.mxu0 %v379_v41  ;;  %410 = vmatpush1.bf16.msra.mxu1 %v379_v41 }
  0x6c   :  { %381 = vmatprep.subr.bf16.mxu0 %v538_v0  ;;  %397 = vmatprep.subr.bf16.mxu1 %v538_v0 }
  0x6f   :  { %383 = vmatpush1.bf16.msra.mxu0 %v382_v44  ;;  %411 = vmatpush1.bf16.msra.mxu1 %v382_v44 }
  0x72   :  { %195 = vmatmul.mubr.f32.vlgmr.msra.gmra.mrb[0].mxu0 %v54_v45  ;;  %215 = vmatmul.mubr.f32.vlgmr.msra.gmra.mrb[0].mxu1 %v62_v46 }
  0x73   :  { %335 = vmatprep.mubr.msk.f32.mxu0 %vm105_vm0, %v57_v47  ;;  %339 = vmatprep.mubr.msk.f32.mxu1 %vm105_vm0, %v65_v48 }
  0x76   :  { %200 = vmatmul.mubr.f32.gmra.mrb[2].mxu0 %v56_v49  ;;  %220 = vmatmul.mubr.f32.gmra.mrb[2].mxu1 %v64_v50 }
  0x77   :  { %336 = vmatprep.mubr.msk.f32.mxu0 %vm105_vm0, %v59_v51  ;;  %340 = vmatprep.mubr.msk.f32.mxu1 %vm105_vm0, %v67_v52 }
  0x7a   :  { %205 = vmatmul.mubr.f32.gmra.mrb[4].mxu0 %v58_v53  ;;  %225 = vmatmul.mubr.f32.gmra.mrb[4].mxu1 %v66_v54 }
  0x7b   :  { %337 = vmatprep.mubr.msk.f32.mxu0 %vm105_vm0, %v61_v55  ;;  %341 = vmatprep.mubr.msk.f32.mxu1 %vm105_vm0, %v69_v56 }
  0x7e   :  { %210 = vmatmul.mubr.f32.gmra.mrb[6].mxu0 %v60_v57  ;;  %230 = vmatmul.mubr.f32.gmra.mrb[6].mxu1 %v68_v58 }
 0x145   :  { %v196_v60 = vpop.f32.mrb[0].mxu0  ;;  %v216_v61 = vpop.f32.mrb[0].mxu1 }
 0x146   :  { %v635_v62 = vadd.f32 %v333_v59, %v196_v60  ;;  %v637_v63 = vadd.f32 %v333_v59, %v216_v61  ;;  %v198_v0 = vpop.f32.mrb[1].mxu0  ;;  %v218_v1 = vpop.f32.mrb[1].mxu1 }
 0x148   :  { %v243_v2 = vmul.f32 %v635_v62, %v635_v62  ;;  %v247_v3 = vmul.f32 %v637_v63, %v637_v63  ;;  %v235_v61 = vmul.f32 0.5, %v635_v62 }
 0x149   :  { %v201_v4 = vpop.f32.mrb[2].mxu0  ;;  %v221_v5 = vpop.f32.mrb[2].mxu1 }
 0x14a   :  { %v251_v6 = vmul.f32 %v243_v2, %v635_v62  ;;  %v255_v7 = vmul.f32 %v247_v3, %v637_v63  ;;  %v645_v8 = vadd.f32 %v333_v59, %v201_v4  ;;  %v647_v9 = vadd.f32 %v333_v59, %v221_v5  ;;  %v203_v10 = vpop.f32.mrb[3].mxu0  ;;  %v223_v11 = vpop.f32.mrb[3].mxu1 }
 0x14b   :  { %v239_v2 = vmul.f32 0.5, %v637_v63 }
 0x14c   :  { %v259_v12 = vmul.f32 0.044715, %v251_v6  ;;  %v263_v13 = vmul.f32 0.044715, %v255_v7  ;;  %v244_v14 = vmul.f32 %v645_v8, %v645_v8  ;;  %v248_v15 = vmul.f32 %v647_v9, %v647_v9 }
 0x14d   :  { %v206_v16 = vpop.f32.mrb[4].mxu0  ;;  %v226_v17 = vpop.f32.mrb[4].mxu1  ;;  %v236_v10 = vmul.f32 0.5, %v645_v8 }
 0x14e   :  { %v267_v18 = vadd.f32 %v259_v12, %v635_v62  ;;  %v271_v19 = vadd.f32 %v263_v13, %v637_v63  ;;  %v252_v20 = vmul.f32 %v244_v14, %v645_v8  ;;  %v656_v21 = vadd.f32 %v333_v59, %v206_v16  ;;  %v208_v22 = vpop.f32.mrb[5].mxu0  ;;  %v228_v23 = vpop.f32.mrb[5].mxu1 }
 0x14f   :  { %v256_v24 = vmul.f32 %v248_v15, %v647_v9  ;;  %v659_v25 = vadd.f32 %v333_v59, %v226_v17  ;;  %v240_v12 = vmul.f32 0.5, %v647_v9 }
 0x150   :  { %v275_v26 = vmul.f32 0.7978846, %v267_v18  ;;  %v279_v27 = vmul.f32 0.7978846, %v271_v19  ;;  %v260_v28 = vmul.f32 0.044715, %v252_v20  ;;  %v245_v29 = vmul.f32 %v656_v21, %v656_v21 }
 0x151   :  { %v264_v30 = vmul.f32 0.044715, %v256_v24  ;;  %v249_v31 = vmul.f32 %v659_v25, %v659_v25  ;;  %v211_v32 = vpop.f32.mrb[6].mxu0  ;;  %v231_v33 = vpop.f32.mrb[6].mxu1  ;;  %v237_v63 = vmul.f32 0.5, %v656_v21  ;;  %v241_v18 = vmul.f32 0.5, %v659_v25 }
 0x152   :  { %421 = vtanh.f32 %v275_v26  ;;  %v268_v34 = vadd.f32 %v260_v28, %v645_v8  ;;  %v253_v35 = vmul.f32 %v245_v29, %v656_v21  ;;  %v212_v36 = vadd.f32 %v333_v59, %v211_v32  ;;  %v213_v37 = vpop.f32.mrb[7].mxu0  ;;  %v233_v38 = vpop.f32.mrb[7].mxu1 }
 0x153   :  { %423 = vtanh.f32 %v279_v27  ;;  %v272_v39 = vadd.f32 %v264_v30, %v647_v9  ;;  %v257_v40 = vmul.f32 %v249_v31, %v659_v25  ;;  %v232_v41 = vadd.f32 %v333_v59, %v231_v33 }
 0x154   :  { %v276_v42 = vmul.f32 0.7978846, %v268_v34  ;;  %v261_v43 = vmul.f32 0.044715, %v253_v35  ;;  %v246_v44 = vmul.f32 %v212_v36, %v212_v36  ;;  %v238_v24 = vmul.f32 0.5, %v212_v36 }
 0x155   :  { %v280_v45 = vmul.f32 0.7978846, %v272_v39  ;;  %v265_v46 = vmul.f32 0.044715, %v257_v40  ;;  %v250_v47 = vmul.f32 %v232_v41, %v232_v41  ;;  %v242_v26 = vmul.f32 0.5, %v232_v41 }
 0x156   :  { %425 = vtanh.f32 %v276_v42  ;;  %v269_v48 = vadd.f32 %v261_v43, %v656_v21  ;;  %v254_v49 = vmul.f32 %v246_v44, %v212_v36 }
 0x157   :  { %427 = vtanh.f32 %v280_v45  ;;  %v273_v50 = vadd.f32 %v265_v46, %v659_v25  ;;  %v258_v51 = vmul.f32 %v250_v47, %v232_v41 }
 0x158   :  { %v277_v52 = vmul.f32 0.7978846, %v269_v48  ;;  %v262_v53 = vmul.f32 0.044715, %v254_v49 }
 0x159   :  { %v281_v54 = vmul.f32 0.7978846, %v273_v50  ;;  %v266_v55 = vmul.f32 0.044715, %v258_v51 }
 0x15a   :  { %429 = vtanh.f32 %v277_v52  ;;  %v270_v56 = vadd.f32 %v262_v53, %v212_v36 }
 0x15b   :  { %431 = vtanh.f32 %v281_v54  ;;  %v274_v57 = vadd.f32 %v266_v55, %v232_v41 }
 0x15c   :  { %v422_v58 = vpop.eup %421  ;;  %v278_v59 = vmul.f32 0.7978846, %v270_v56 }
 0x15d   :  { %v424_v60 = vpop.eup %423  ;;  %v291_v0 = vadd.f32 1.0, %v422_v58  ;;  %v282_v1 = vmul.f32 0.7978846, %v274_v57 }
 0x15e   :  { %v295_v3 = vadd.f32 1.0, %v424_v60  ;;  %433 = vtanh.f32 %v278_v59 }
 0x15f   :  { %v299_v4 = vmul.f32 %v291_v0, %v235_v61  ;;  %435 = vtanh.f32 %v282_v1 }
 0x160   :  { %v426_v5 = vpop.eup %425  ;;  %v303_v6 = vmul.f32 %v295_v3, %v239_v2 }
 0x161   :  { %v428_v7 = vpop.eup %427  ;;  %307 = vst [vmem:[#allocation8] sm:$0xff] %v299_v4  ;;  %v292_v11 = vadd.f32 1.0, %v426_v5 }
 0x162   :  { %311 = vst [vmem:[#allocation8 + $0x20] sm:$0xff] %v303_v6  ;;  %v296_v13 = vadd.f32 1.0, %v428_v7 }
 0x163   :  { %v300_v62 = vmul.f32 %v292_v11, %v236_v10 }
 0x164   :  { %v430_v14 = vpop.eup %429  ;;  %v304_v15 = vmul.f32 %v296_v13, %v240_v12 }
 0x165   :  { %v432_v16 = vpop.eup %431  ;;  %308 = vst [vmem:[#allocation8 + $0x8] sm:$0xff] %v300_v62  ;;  %v293_v17 = vadd.f32 1.0, %v430_v14 }
 0x166   :  { %312 = vst [vmem:[#allocation8 + $0x28] sm:$0xff] %v304_v15  ;;  %v297_v19 = vadd.f32 1.0, %v432_v16 }
 0x167   :  { %v301_v20 = vmul.f32 %v293_v17, %v237_v63 }
 0x168   :  { %v434_v22 = vpop.eup %433  ;;  %v305_v8 = vmul.f32 %v297_v19, %v241_v18 }
 0x169   :  { %v436_v23 = vpop.eup %435  ;;  %309 = vst [vmem:[#allocation8 + $0x10] sm:$0xff] %v301_v20  ;;  %v294_v9 = vadd.f32 1.0, %v434_v22 }
 0x16a   :  { %313 = vst [vmem:[#allocation8 + $0x30] sm:$0xff] %v305_v8  ;;  %v298_v27 = vadd.f32 1.0, %v436_v23 }
 0x16b   :  { %v302_v28 = vmul.f32 %v294_v9, %v238_v24 }
 0x16c   :  { %v306_v29 = vmul.f32 %v298_v27, %v242_v26 }
 0x16d   :  { %310 = vst [vmem:[#allocation8 + $0x18] sm:$0xff] %v302_v28 }
 0x16e   :  { %314 = vst [vmem:[#allocation8 + $0x38] sm:$0xff] %v306_v29 }
 0x16f   :  { %514 = shalt.err (!%p511_p0)
}
 0x170   :  { %s515_s30 = scalar_lea.hbm %s695_s3, 1024 }
 0x171   :  { %p516_p1 = scmp.ne.s32.totalorder %s695_s3, %s515_s30  ;;  %p519_p2 = scmp.lt.u32.totalorder %s515_s30, %s695_s3 }
 0x173   :  { %p521_p3 = pnand %p519_p2, %p516_p1 }
 0x175   :  { %524 = shalt.err (!%p521_p3)
}
 0x176   :  { %326 = dma.vmem_to_hbm [thread:$0]  %s321_s26, 1024, %s695_s3, [#allocation4], %s532_s22, %s532_s22, %s533_s23  }
 0x177   :  { %529 = dma.done.wait [#allocation4], 1024  }
 0x178   :  { %530 = vsyncadd [#allocation4], 4294966272 }
 0x179   :  { %330 = vsyncpa [#allocation3], 1 }
 0x17a   :  { %331 = vsyncpa [#allocation6], 1 }
 0x17b   :  { %332 = vsyncpa [#allocation4], 1 }

</bundles_post_ra>
